<compile_context>
chip_gen: v5e
topology: v5e:2x2
jax: 0.10.0
libtpu: 0.0.40
codegen_flags: <defaults>
</compile_context>

<pallas_src>
import jax
import jax.numpy as jnp
from jax.experimental import pallas as pl
from jax.experimental.pallas import tpu as pltpu


LATENT = 16
H1 = 64
H2 = 256
OUT = 784           # 28 * 28 — kernel stores this width directly (no wrapper slice copy)
OUT_PADDED = 896    # 7 * 128 — layer-3 weight lane padding (zero columns) for an aligned MXU matmul
MAX_TILE_B = 512    # upper bound on rows per grid step
MIN_TILE_B = 256    # below this the ~0.35 us per-step overhead dominates; only split larger batches


def _round_up(x, m):
    return ((x + m - 1) // m) * m


def _choose_tiling(B):
    """Pick (tile_b, n_tiles): minimal batch padding, even tile count for v7x megacore balance."""
    n = pl.cdiv(B, MAX_TILE_B)
    if B > MIN_TILE_B and n % 2:
        n += 1                              # even split across the two v7x TensorCores
    tile_b = _round_up(pl.cdiv(B, n), 8)    # sublane-aligned rows
    return tile_b, n


def decoder_kernel(x_ref, w1_ref, b1_ref, w2_ref, b2_ref, w3_ref, b3_ref, o_ref):
    # Layer 1: Linear(16, 64) + ReLU — bf16 matmul, f32 accumulation, single cast fused with ReLU.
    h1 = jnp.dot(x_ref[...].astype(jnp.bfloat16), w1_ref[...],
                 preferred_element_type=jnp.float32)
    h1 = jnp.maximum(h1 + b1_ref[...], 0.0).astype(jnp.bfloat16)

    # Layer 2: Linear(64, 256) + ReLU — same pattern; h2 lands directly in bf16 for layer 3.
    h2 = jnp.dot(h1, w2_ref[...], preferred_element_type=jnp.float32)
    h2 = jnp.maximum(h2 + b2_ref[...], 0.0).astype(jnp.bfloat16)

    # Layer 3 (dominant FLOPs): bf16 x bf16 -> f32 acc on the lane-padded 896-wide weight,
    # then drop the 112 zero-weight pad lanes BEFORE the epilogue so bias/sigmoid/store only
    # touch the 784 real outputs (output writeback is the kernel's bottleneck).
    logits = jnp.dot(h2, w3_ref[...], preferred_element_type=jnp.float32)
    logits = logits[:, :OUT]
    o_ref[...] = jax.nn.sigmoid(logits + b3_ref[...]).astype(o_ref.dtype)


def decoder_forward(x, params, out_dtype=jnp.float32):
    """x: (B, 16) float32 -> (B, 1, 28, 28) in `out_dtype`.

    out_dtype=jnp.bfloat16 halves the dominant output writeback if the consumer tolerates it;
    the default float32 matches the PyTorch module.
    """
    w1, b1, w2, b2, w3, b3 = params
    B = x.shape[0]

    # One-time param prep: bf16 weights (all matmuls accumulate in f32); layer-3 weight
    # lane-padded 784 -> 896 with zero columns. Biases stay f32.
    w1b = w1.astype(jnp.bfloat16)
    w2b = w2.astype(jnp.bfloat16)
    w3p = jnp.zeros((H2, OUT_PADDED), jnp.bfloat16).at[:, :OUT].set(w3.astype(jnp.bfloat16))

    tile_b, n_tiles = _choose_tiling(B)
    b_pad = tile_b * n_tiles
    if b_pad != B:
        x = jnp.pad(x, ((0, b_pad - B), (0, 0)))

    out_size = jnp.dtype(out_dtype).itemsize
    flops = 2 * b_pad * (LATENT * H1 + H1 * H2 + H2 * OUT_PADDED)
    transcendentals = b_pad * OUT
    param_bytes = (LATENT * H1 + H1 * H2 + H2 * OUT_PADDED) * 2 + (H1 + H2 + OUT) * 4
    bytes_accessed = b_pad * LATENT * 4 + b_pad * OUT * out_size + param_bytes

    # Right-sized VMEM budget: double-buffered x/out tiles + params (default double-buffered) +
    # in-flight activations, 2x headroom, 16 MiB floor (actual usage is only a few MiB).
    act_bytes = tile_b * (LATENT * 2 + H1 * 4 + H2 * 2 + OUT_PADDED * 4)
    vmem_limit = max(
        16 * 1024 * 1024,
        2 * (2 * tile_b * LATENT * 4 + 2 * tile_b * OUT * out_size + 2 * param_bytes + act_bytes),
    )

    out_flat = pl.pallas_call(
        decoder_kernel,
        out_shape=jax.ShapeDtypeStruct((b_pad, OUT), out_dtype),
        grid_spec=pltpu.PrefetchScalarGridSpec(
            num_scalar_prefetch=0,
            grid=(n_tiles,),
            in_specs=[
                pl.BlockSpec((tile_b, LATENT), lambda i: (i, 0)),     # x tile (pipelined)
                pl.BlockSpec((LATENT, H1), lambda i: (0, 0)),         # w1 (bf16), resident
                pl.BlockSpec((1, H1), lambda i: (0, 0)),              # b1, resident
                pl.BlockSpec((H1, H2), lambda i: (0, 0)),             # w2 (bf16), resident
                pl.BlockSpec((1, H2), lambda i: (0, 0)),              # b2, resident
                pl.BlockSpec((H2, OUT_PADDED), lambda i: (0, 0)),     # w3 (bf16, padded), resident
                pl.BlockSpec((1, OUT), lambda i: (0, 0)),             # b3, resident
            ],
            out_specs=pl.BlockSpec((tile_b, OUT), lambda i: (i, 0)),  # 784-wide store, no pad lanes
        ),
        compiler_params=pltpu.CompilerParams(
            dimension_semantics=("parallel",),        # megacore sharding on v7x
            vmem_limit_bytes=int(vmem_limit),
        ),
        cost_estimate=pl.CostEstimate(
            flops=flops,
            transcendentals=transcendentals,
            bytes_accessed=bytes_accessed,
        ),
    )(x, w1b, b1, w2b, b2, w3p, b3)

    if b_pad != B:
        out_flat = out_flat[:B]
    return out_flat.reshape(B, 1, 28, 28)


def init_params(key):
    """Deterministic init mirroring nn.Linear shapes.

    torch nn.Linear(i, o) has weight (o, i), bias (o,); we store W as (i, o) so the kernel
    computes x @ W + b. Uniform(-1/sqrt(fan_in), 1/sqrt(fan_in)) matches PyTorch's default init.
    """
    dims = [(LATENT, H1), (H1, H2), (H2, OUT)]
    params = []
    for (fan_in, fan_out) in dims:
        key, kw, kb = jax.random.split(key, 3)
        bound = 1.0 / jnp.sqrt(fan_in)
        w = jax.random.uniform(kw, (fan_in, fan_out), jnp.float32, -bound, bound)
        b = jax.random.uniform(kb, (1, fan_out), jnp.float32, -bound, bound)
        params += [w, b]
    return tuple(params)


def reference_forward(x, params):
    """Plain-JAX f32 reference for sanity checking."""
    w1, b1, w2, b2, w3, b3 = params
    h1 = jnp.maximum(x @ w1 + b1, 0.0)
    h2 = jnp.maximum(h1 @ w2 + b2, 0.0)
    out = jax.nn.sigmoid(h2 @ w3 + b3)
    return out.reshape(-1, 1, 28, 28)


if __name__ == "__main__":
    key = jax.random.PRNGKey(0)
    k_params, k_x1, k_x2 = jax.random.split(key, 3)
    params = init_params(k_params)

    # Small batch: single tile, no padding (the wrapper reshape is free).
    B1 = 8
    x1 = jax.random.normal(k_x1, (B1, LATENT), jnp.float32)
    out1 = jax.block_until_ready(decoder_forward(x1, params))
    assert out1.shape == (B1, 1, 28, 28), out1.shape
    ref1 = reference_forward(x1, params)
    assert jnp.allclose(out1, ref1, atol=5e-3), float(jnp.max(jnp.abs(out1 - ref1)))

    # Ragged multi-tile batch: exercises the grid, balanced tiling (2 tiles of 304) and
    # the minimal 8-row batch padding path.
    B2 = 600
    x2 = jax.random.normal(k_x2, (B2, LATENT), jnp.float32)
    out2 = jax.block_until_ready(decoder_forward(x2, params))
    assert out2.shape == (B2, 1, 28, 28), out2.shape
    ref2 = reference_forward(x2, params)
    assert jnp.allclose(out2, ref2, atol=5e-3), float(jnp.max(jnp.abs(out2 - ref2)))

    print("KERNEL_OK")
</pallas_src>

<mosaic_0001>
module attributes {stable_mosaic.version = 11 : i64} {
  func.func @decoder_kernel(%arg0: i32, %arg1: memref<8x16xf32, #tpu.memory_space<vmem>>, %arg2: memref<16x64xbf16, #tpu.memory_space<vmem>>, %arg3: memref<1x64xf32, #tpu.memory_space<vmem>>, %arg4: memref<64x256xbf16, #tpu.memory_space<vmem>>, %arg5: memref<1x256xf32, #tpu.memory_space<vmem>>, %arg6: memref<256x896xbf16, #tpu.memory_space<vmem>>, %arg7: memref<1x784xf32, #tpu.memory_space<vmem>>, %arg8: memref<8x784xf32, #tpu.memory_space<vmem>>) attributes {dimension_semantics = [#tpu.dimension_semantics<parallel>], iteration_bounds = array<i64: 1>, scalar_prefetch = 0 : i64, scratch_operands = 0 : i64, tpu.core_type = #tpu.core_type<tc>, window_params = [{transform_indices = @transform_0, window_bounds = array<i64: 8, 16>}, {pipeline_mode = #tpu.pipeline_mode<synchronous>, transform_indices = @transform_1, window_bounds = array<i64: 16, 64>}, {pipeline_mode = #tpu.pipeline_mode<synchronous>, transform_indices = @transform_2, window_bounds = array<i64: 1, 64>}, {pipeline_mode = #tpu.pipeline_mode<synchronous>, transform_indices = @transform_3, window_bounds = array<i64: 64, 256>}, {pipeline_mode = #tpu.pipeline_mode<synchronous>, transform_indices = @transform_4, window_bounds = array<i64: 1, 256>}, {pipeline_mode = #tpu.pipeline_mode<synchronous>, transform_indices = @transform_5, window_bounds = array<i64: 256, 896>}, {pipeline_mode = #tpu.pipeline_mode<synchronous>, transform_indices = @transform_6, window_bounds = array<i64: 1, 784>}, {transform_indices = @transform_7, window_bounds = array<i64: 8, 784>}]} {
    %c0 = arith.constant 0 : index
    %c0_0 = arith.constant 0 : index
    %0 = vector.load %arg1[%c0, %c0_0] : memref<8x16xf32, #tpu.memory_space<vmem>>, vector<8x16xf32>
    %1 = arith.truncf %0 : vector<8x16xf32> to vector<8x16xbf16>
    %c0_1 = arith.constant 0 : index
    %c0_2 = arith.constant 0 : index
    %2 = vector.load %arg2[%c0_1, %c0_2] : memref<16x64xbf16, #tpu.memory_space<vmem>>, vector<16x64xbf16>
    %cst = arith.constant dense<0.000000e+00> : vector<8x64xf32>
    %3 = tpu.matmul %1, %2, %cst {dimension_numbers = #tpu.dot_dimension_numbers<[1], [0], [0], [1], [0, 0, 1, 1], [], []>} : vector<8x16xbf16>, vector<16x64xbf16>, vector<8x64xf32> -> vector<8x64xf32>
    %c0_3 = arith.constant 0 : index
    %c0_4 = arith.constant 0 : index
    %4 = vector.load %arg3[%c0_3, %c0_4] : memref<1x64xf32, #tpu.memory_space<vmem>>, vector<1x64xf32>
    %5 = vector.broadcast %4 : vector<1x64xf32> to vector<8x64xf32>
    %6 = arith.addf %3, %5 : vector<8x64xf32>
    %cst_5 = arith.constant 0.000000e+00 : f32
    %7 = vector.broadcast %cst_5 : f32 to vector<8x64xf32>
    %8 = arith.maximumf %6, %7 : vector<8x64xf32>
    %9 = arith.truncf %8 : vector<8x64xf32> to vector<8x64xbf16>
    %c0_6 = arith.constant 0 : index
    %c0_7 = arith.constant 0 : index
    %10 = vector.load %arg4[%c0_6, %c0_7] : memref<64x256xbf16, #tpu.memory_space<vmem>>, vector<64x256xbf16>
    %cst_8 = arith.constant dense<0.000000e+00> : vector<8x256xf32>
    %11 = tpu.matmul %9, %10, %cst_8 {dimension_numbers = #tpu.dot_dimension_numbers<[1], [0], [0], [1], [0, 0, 1, 1], [], []>} : vector<8x64xbf16>, vector<64x256xbf16>, vector<8x256xf32> -> vector<8x256xf32>
    %c0_9 = arith.constant 0 : index
    %c0_10 = arith.constant 0 : index
    %12 = vector.load %arg5[%c0_9, %c0_10] : memref<1x256xf32, #tpu.memory_space<vmem>>, vector<1x256xf32>
    %13 = vector.broadcast %12 : vector<1x256xf32> to vector<8x256xf32>
    %14 = arith.addf %11, %13 : vector<8x256xf32>
    %cst_11 = arith.constant 0.000000e+00 : f32
    %15 = vector.broadcast %cst_11 : f32 to vector<8x256xf32>
    %16 = arith.maximumf %14, %15 : vector<8x256xf32>
    %17 = arith.truncf %16 : vector<8x256xf32> to vector<8x256xbf16>
    %c0_12 = arith.constant 0 : index
    %c0_13 = arith.constant 0 : index
    %18 = vector.load %arg6[%c0_12, %c0_13] : memref<256x896xbf16, #tpu.memory_space<vmem>>, vector<256x896xbf16>
    %cst_14 = arith.constant dense<0.000000e+00> : vector<8x896xf32>
    %19 = tpu.matmul %17, %18, %cst_14 {dimension_numbers = #tpu.dot_dimension_numbers<[1], [0], [0], [1], [0, 0, 1, 1], [], []>} : vector<8x256xbf16>, vector<256x896xbf16>, vector<8x896xf32> -> vector<8x896xf32>
    %20 = vector.extract_strided_slice %19 {offsets = [0, 0], sizes = [8, 784], strides = [1, 1]} : vector<8x896xf32> to vector<8x784xf32>
    %c0_15 = arith.constant 0 : index
    %c0_16 = arith.constant 0 : index
    %21 = vector.load %arg7[%c0_15, %c0_16] : memref<1x784xf32, #tpu.memory_space<vmem>>, vector<1x784xf32>
    %22 = vector.broadcast %21 : vector<1x784xf32> to vector<8x784xf32>
    %23 = arith.addf %20, %22 : vector<8x784xf32>
    %24 = arith.negf %23 : vector<8x784xf32>
    %25 = math.exp %24 : vector<8x784xf32>
    %cst_17 = arith.constant 1.000000e+00 : f32
    %26 = vector.broadcast %cst_17 : f32 to vector<8x784xf32>
    %27 = arith.addf %26, %25 : vector<8x784xf32>
    %28 = arith.divf %26, %27 : vector<8x784xf32>
    %c0_18 = arith.constant 0 : index
    %c0_19 = arith.constant 0 : index
    %29 = vector.load %arg8[%c0_18, %c0_19] : memref<8x784xf32, #tpu.memory_space<vmem>>, vector<8x784xf32>
    tpu.vector_store %arg8[%c0_18, %c0_19], %28 {strides = array<i32>} : memref<8x784xf32, #tpu.memory_space<vmem>>, vector<8x784xf32>,
    return
  }
  func.func @transform_0(%arg0: i32) -> (i32, i32) {
    %c0_i32 = arith.constant 0 : i32
    %c0_i32_0 = arith.constant 0 : i32
    return %arg0, %c0_i32 : i32, i32
  }
  func.func @transform_1(%arg0: i32) -> (i32, i32) {
    %c0_i32 = arith.constant 0 : i32
    %c0_i32_0 = arith.constant 0 : i32
    %c0_i32_1 = arith.constant 0 : i32
    return %c0_i32, %c0_i32_0 : i32, i32
  }
  func.func @transform_2(%arg0: i32) -> (i32, i32) {
    %c0_i32 = arith.constant 0 : i32
    %c0_i32_0 = arith.constant 0 : i32
    %c0_i32_1 = arith.constant 0 : i32
    return %c0_i32, %c0_i32_0 : i32, i32
  }
  func.func @transform_3(%arg0: i32) -> (i32, i32) {
    %c0_i32 = arith.constant 0 : i32
    %c0_i32_0 = arith.constant 0 : i32
    %c0_i32_1 = arith.constant 0 : i32
    return %c0_i32, %c0_i32_0 : i32, i32
  }
  func.func @transform_4(%arg0: i32) -> (i32, i32) {
    %c0_i32 = arith.constant 0 : i32
    %c0_i32_0 = arith.constant 0 : i32
    %c0_i32_1 = arith.constant 0 : i32
    return %c0_i32, %c0_i32_0 : i32, i32
  }
  func.func @transform_5(%arg0: i32) -> (i32, i32) {
    %c0_i32 = arith.constant 0 : i32
    %c0_i32_0 = arith.constant 0 : i32
    %c0_i32_1 = arith.constant 0 : i32
    return %c0_i32, %c0_i32_0 : i32, i32
  }
  func.func @transform_6(%arg0: i32) -> (i32, i32) {
    %c0_i32 = arith.constant 0 : i32
    %c0_i32_0 = arith.constant 0 : i32
    %c0_i32_1 = arith.constant 0 : i32
    return %c0_i32, %c0_i32_0 : i32, i32
  }
  func.func @transform_7(%arg0: i32) -> (i32, i32) {
    %c0_i32 = arith.constant 0 : i32
    %c0_i32_0 = arith.constant 0 : i32
    return %arg0, %c0_i32 : i32, i32
  }
}

</mosaic_0001>

<bundles_post_ra>
// kernel: tpu_custom_call.1
= control target key start
LH: loop header
LB: loop body
LE: loop exit
PB: predicated region body
PF: predicated region fallthrough
CT: control target
= control target key end

     0   :  { %12 = vsyncpa [#allocation3], 0  ;;  %s2206_s0 = inlined_call_operand.hbm [shape: f32[8,16], index: 0, kind: input, shape index: {}]   ;;  %s2207_s1 = inlined_call_operand.hbm [shape: bf16[16,64], index: 1, kind: input, shape index: {}]   ;;  %s2208_s2 = inlined_call_operand.vmem [shape: f32[1,64], index: 2, kind: input, shape index: {}]   ;;  %s2209_s3 = inlined_call_operand.hbm [shape: bf16[64,256], index: 3, kind: input, shape index: {}]   ;;  %s2210_s4 = inlined_call_operand.vmem [shape: f32[1,256], index: 4, kind: input, shape index: {}]   ;;  %s2211_s5 = inlined_call_operand.hbm [shape: bf16[256,896], index: 5, kind: input, shape index: {}]   ;;  %s2212_s6 = inlined_call_operand.hbm [shape: f32[1,784], index: 6, kind: input, shape index: {}]   ;;  %s2213_s7 = inlined_call_operand.hbm [shape: f32[8,784], index: 7, kind: output, shape index: {}]  }
   0x1   :  { %13 = vsyncpa [#allocation6], 0 }
   0x2   :  { %14 = vsyncpa [#allocation9], 0  ;;  %s31_s26 = sshll.u32 %s2207_s1, 4  ;;  %s32_s26 = int_to_ptr.hbm [resolvable:$true] %s31_s26 }
   0x3   :  { %15 = vsyncpa [#allocation4], 0  ;;  %s2099_s27 = smov [#allocation5]   ;;  %s61_s8 = sshll.u32 %s2211_s5, 4  ;;  %s62_s8 = int_to_ptr.hbm [resolvable:$true] %s61_s8 }
   0x4   :  { %s33_s28 = sshll.u32 %s2099_s27, 4  ;;  %s2100_s9 = smov 64   ;;  %s34_s28 = int_to_ptr.vmem [resolvable:$true] %s33_s28 }
   0x5   :  { %s2101_s10 = smov 4   ;;  %s2102_s11 = smov [#allocation8]  }
   0x6   :  { %39 = dma.hbm_to_vmem [thread:$0]  %s32_s26, 128, %s34_s28, [#allocation6], %s2100_s9, %s2100_s9, %s2101_s10  }
   0x7   :  { %s63_s12 = sshll.u32 %s2102_s11, 4  ;;  %s2103_s13 = smov 448   ;;  %s64_s12 = int_to_ptr.vmem [resolvable:$true] %s63_s12 }
   0x8   :  { %s2104_s14 = smov 28   ;;  %s21_s16 = sshll.u32 %s2206_s0, 4  ;;  %s22_s16 = int_to_ptr.hbm [resolvable:$true] %s21_s16 }
   0x9   :  { %69 = dma.hbm_to_vmem [thread:$0]  %s62_s8, 14336, %s64_s12, [#allocation9], %s2103_s13, %s2103_s13, %s2104_s14  }
   0xa   :  { %s2105_s17 = smov [#allocation2]   ;;  %s46_s20 = sshll.u32 %s2209_s3, 4  ;;  %s47_s20 = int_to_ptr.hbm [resolvable:$true] %s46_s20 }
   0xb   :  { %s23_s18 = sshll.u32 %s2105_s17, 4  ;;  %s2106_s21 = smov [#allocation7]   ;;  %s24_s18 = int_to_ptr.vmem [resolvable:$true] %s23_s18 }
   0xc   :  { %26 = dma.hbm_to_vmem [thread:$0]  %s22_s16, 128, %s24_s18, [#allocation3]  }
   0xd   :  { %s48_s22 = sshll.u32 %s2106_s21, 4  ;;  %s2107_s23 = smov 128   ;;  %s49_s22 = int_to_ptr.vmem [resolvable:$true] %s48_s22 }
   0xe   :  { %s2108_s24 = smov 8   ;;  %s75_s0 = sshll.u32 %s2212_s6, 4  ;;  %s76_s0 = int_to_ptr.hbm [resolvable:$true] %s75_s0 }
   0xf   :  { %54 = dma.hbm_to_vmem [thread:$0]  %s47_s20, 1024, %s49_s22, [#allocation6], %s2107_s23, %s2107_s23, %s2108_s24  }
  0x10   :  { %s2109_s27 = smov [#allocation10]  }
  0x11   :  { %s77_s28 = sshll.u32 %s2109_s27, 4  ;;  %s78_s28 = int_to_ptr.vmem [resolvable:$true] %s77_s28 }
  0x12   :  { %80 = dma.hbm_to_vmem [thread:$0]  %s76_s0, 112, %s78_s28, [#allocation9]  }
  0x13   :  { %2091 = dma.done.wait [#allocation3], 128  }
  0x14   :  { %2092 = vsyncadd [#allocation3], 4294967168 }
  0x15   :  { %2093 = dma.done.wait [#allocation6], 1152  }
  0x16   :  { %2094 = vsyncadd [#allocation6], 4294966144 }
  0x17   :  { %2095 = dma.done.wait [#allocation9], 14448  }
  0x18   :  { %2096 = vsyncadd [#allocation9], 4294952848  ;;  %v1785_v0 = vld [vmem:[#allocation5] sm:$0xff]  ;;  %v102_v1 = vld [vmem:[#allocation2] sm:$0xff]  ;;  %vm116_vm0 = vcmask 130048   ;;  %vm189_vm1 = vcmask 523264  }
  0x19   :  { %v1322_v2 = vld [vmem:[#allocation7 + $0x30] sm:$0xf]  ;;  %v103_v3 = vpack.c.bf16 %v102_v1, %v102_v1  ;;  %v1793_v4 = vld [vmem:[#allocation7 + $0x34] sm:$0xf0]  ;;  %v1792_v5 = vld [vmem:[#allocation7 + $0x34] sm:$0xf]  ;;  %127 = vmatpush.bf16.msra.mxu1 %v1785_v0 }
  0x1a   :  { %v1324_v6 = vld [vmem:[#allocation7 + $0x38] sm:$0xf0]  ;;  %v1323_v7 = vor.u32 %v1793_v4, %v1322_v2  ;;  %v1314_v9 = vld [vmem:[#allocation7 + $0x20] sm:$0xf]  ;;  %v1791_v10 = vld [vmem:[#allocation7 + $0x24] sm:$0xf0] }
  0x1b   :  { %v1327_v8 = vor.u32 %v1792_v5, %v1324_v6  ;;  %v1790_v11 = vld [vmem:[#allocation7 + $0x24] sm:$0xf]  ;;  %v1316_v12 = vld [vmem:[#allocation7 + $0x28] sm:$0xf0]  ;;  %v1315_v13 = vor.u32 %v1791_v10, %v1314_v9  ;;  %v1306_v15 = vld [vmem:[#allocation7 + $0x10] sm:$0xf] }
  0x1c   :  { %v1319_v14 = vor.u32 %v1790_v11, %v1316_v12  ;;  %1295 = vmatmul.msk.bf16.vlgmr.msra.gmra.mxu1 %vm116_vm0, %v103_v3  ;;  %v1789_v16 = vld [vmem:[#allocation7 + $0x14] sm:$0xf0]  ;;  %v1788_v17 = vld [vmem:[#allocation7 + $0x14] sm:$0xf]  ;;  %v1308_v19 = vld [vmem:[#allocation7 + $0x18] sm:$0xf0] }
  0x1d   :  { %197 = vmatpush.bf16.msrb.mxu1 %v1323_v7  ;;  %210 = vmatpush.bf16.msra.mxu2 %v1327_v8  ;;  %v1307_v18 = vor.u32 %v1789_v16, %v1306_v15  ;;  %v1311_v20 = vor.u32 %v1788_v17, %v1308_v19  ;;  %v1298_v21 = vld [vmem:[#allocation7] sm:$0xf]  ;;  %v1787_v22 = vld [vmem:[#allocation7 + $0x4] sm:$0xf0]  ;;  %v1786_v23 = vld [vmem:[#allocation7 + $0x4] sm:$0xf] }
  0x1e   :  { %v1299_v24 = vor.u32 %v1787_v22, %v1298_v21  ;;  %v1300_v25 = vld [vmem:[#allocation7 + $0x8] sm:$0xf0]  ;;  %v1528_v27 = vld [vmem:[#allocation8 + $0x188] sm:$0xf]  ;;  %v1846_v28 = vld [vmem:[#allocation8 + $0x1a0] sm:$0xf0] }
  0x1f   :  { %v1303_v26 = vor.u32 %v1786_v23, %v1300_v25  ;;  %v1843_v29 = vld [vmem:[#allocation8 + $0x18c] sm:$0xf]  ;;  %v1529_v30 = vor.u32 %v1846_v28, %v1528_v27  ;;  %v1530_v31 = vld [vmem:[#allocation8 + $0x1a4] sm:$0xf0]  ;;  %v1500_v32 = vld [vmem:[#allocation8 + $0x150] sm:$0xf] }
  0x20   :  { %v1839_v33 = vld [vmem:[#allocation8 + $0x168] sm:$0xf0]  ;;  %v1533_v34 = vor.u32 %v1843_v29, %v1530_v31  ;;  %v1836_v35 = vld [vmem:[#allocation8 + $0x154] sm:$0xf]  ;;  %v1502_v36 = vld [vmem:[#allocation8 + $0x16c] sm:$0xf0] }
  0x21   :  { %198 = vmatpush.bf16.msrb.mxu1 %v1315_v13  ;;  %211 = vmatpush.bf16.msra.mxu2 %v1319_v14  ;;  %v1752_v37 = vld [vmem:[#allocation8 + $0x348] sm:$0xf]  ;;  %v1501_v38 = vor.u32 %v1839_v33, %v1500_v32  ;;  %v1902_v39 = vld [vmem:[#allocation8 + $0x360] sm:$0xf0]  ;;  %v1899_v40 = vld [vmem:[#allocation8 + $0x34c] sm:$0xf]  ;;  %v1505_v42 = vor.u32 %v1836_v35, %v1502_v36 }
  0x22   :  { %927 = vmatpush.bf16.msra.mxu3 %v1529_v30  ;;  %v1754_v41 = vld [vmem:[#allocation8 + $0x364] sm:$0xf0]  ;;  %v1753_v43 = vor.u32 %v1902_v39, %v1752_v37  ;;  %v1472_v45 = vld [vmem:[#allocation8 + $0x118] sm:$0xf]  ;;  %v1832_v46 = vld [vmem:[#allocation8 + $0x130] sm:$0xf0] }
  0x23   :  { %v1757_v44 = vor.u32 %v1899_v40, %v1754_v41  ;;  %v1829_v47 = vld [vmem:[#allocation8 + $0x11c] sm:$0xf]  ;;  %v1474_v48 = vld [vmem:[#allocation8 + $0x134] sm:$0xf0]  ;;  %v1724_v49 = vld [vmem:[#allocation8 + $0x310] sm:$0xf]  ;;  %v1473_v54 = vor.u32 %v1832_v46, %v1472_v45 }
  0x24   :  { %v1895_v50 = vld [vmem:[#allocation8 + $0x328] sm:$0xf0]  ;;  %940 = vmatpush.bf16.msra.mxu0 %v1753_v43  ;;  %v1892_v52 = vld [vmem:[#allocation8 + $0x314] sm:$0xf]  ;;  %v1726_v53 = vld [vmem:[#allocation8 + $0x32c] sm:$0xf0]  ;;  %v1477_v58 = vor.u32 %v1829_v47, %v1474_v48 }
  0x25   :  { %199 = vmatpush.bf16.msrb.mxu1 %v1307_v18  ;;  %212 = vmatpush.bf16.msra.mxu2 %v1311_v20  ;;  %v1725_v51 = vor.u32 %v1895_v50, %v1724_v49  ;;  %v1729_v55 = vor.u32 %v1892_v52, %v1726_v53  ;;  %v1444_v56 = vld [vmem:[#allocation8 + $0xe0] sm:$0xf]  ;;  %v1825_v57 = vld [vmem:[#allocation8 + $0xf8] sm:$0xf0]  ;;  %v1696_v59 = vld [vmem:[#allocation8 + $0x2d8] sm:$0xf] }
  0x26   :  { %928 = vmatpush.bf16.msra.mxu3 %v1501_v38  ;;  %v1888_v60 = vld [vmem:[#allocation8 + $0x2f0] sm:$0xf0]  ;;  %v1885_v61 = vld [vmem:[#allocation8 + $0x2dc] sm:$0xf]  ;;  %v1822_v62 = vld [vmem:[#allocation8 + $0xe4] sm:$0xf]  ;;  %v1445_v4 = vor.u32 %v1825_v57, %v1444_v56 }
  0x27   :  { %v1446_v63 = vld [vmem:[#allocation8 + $0xfc] sm:$0xf0]  ;;  %v1698_v0 = vld [vmem:[#allocation8 + $0x2f4] sm:$0xf0]  ;;  %v1697_v1 = vor.u32 %v1888_v60, %v1696_v59  ;;  %v1881_v5 = vld [vmem:[#allocation8 + $0x2b8] sm:$0xf0] }
  0x28   :  { %941 = vmatpush.bf16.msra.mxu0 %v1725_v51  ;;  %v1701_v2 = vor.u32 %v1885_v61, %v1698_v0  ;;  %v1668_v3 = vld [vmem:[#allocation8 + $0x2a0] sm:$0xf]  ;;  %v1878_v6 = vld [vmem:[#allocation8 + $0x2a4] sm:$0xf]  ;;  %v1449_v8 = vor.u32 %v1822_v62, %v1446_v63  ;;  %v1416_v9 = vld [vmem:[#allocation8 + $0xa8] sm:$0xf] }
  0x29   :  { %200 = vmatpush.bf16.msrb.mxu1 %v1299_v24  ;;  %213 = vmatpush.bf16.msra.mxu2 %v1303_v26  ;;  %v1670_v7 = vld [vmem:[#allocation8 + $0x2bc] sm:$0xf0]  ;;  %v1818_v10 = vld [vmem:[#allocation8 + $0xc0] sm:$0xf0]  ;;  %v1815_v11 = vld [vmem:[#allocation8 + $0xac] sm:$0xf]  ;;  %v1669_v13 = vor.u32 %v1881_v5, %v1668_v3 }
  0x2a   :  { %929 = vmatpush.bf16.msra.mxu3 %v1473_v54  ;;  %v1418_v12 = vld [vmem:[#allocation8 + $0xc4] sm:$0xf0]  ;;  %v1673_v14 = vor.u32 %v1878_v6, %v1670_v7  ;;  %v1417_v16 = vor.u32 %v1818_v10, %v1416_v9  ;;  %v1874_v17 = vld [vmem:[#allocation8 + $0x280] sm:$0xf0]  ;;  %v1871_v18 = vld [vmem:[#allocation8 + $0x26c] sm:$0xf] }
  0x2b   :  { %v1640_v15 = vld [vmem:[#allocation8 + $0x268] sm:$0xf]  ;;  %v1421_v20 = vor.u32 %v1815_v11, %v1418_v12  ;;  %v1388_v21 = vld [vmem:[#allocation8 + $0x70] sm:$0xf]  ;;  %v1811_v22 = vld [vmem:[#allocation8 + $0x88] sm:$0xf0] }
  0x2c   :  { %942 = vmatpush.bf16.msra.mxu0 %v1697_v1  ;;  %v1642_v19 = vld [vmem:[#allocation8 + $0x284] sm:$0xf0]  ;;  %v1808_v23 = vld [vmem:[#allocation8 + $0x74] sm:$0xf]  ;;  %v1390_v24 = vld [vmem:[#allocation8 + $0x8c] sm:$0xf0]  ;;  %v1641_v25 = vor.u32 %v1874_v17, %v1640_v15  ;;  %v1389_v28 = vor.u32 %v1811_v22, %v1388_v21 }
  0x2d   :  { %953 = vmatpush.bf16.msra.mxu1 %v1533_v34  ;;  %966 = vmatpush.bf16.msrb.mxu2 %v1757_v44  ;;  %v1645_v26 = vor.u32 %v1871_v18, %v1642_v19  ;;  %v1612_v27 = vld [vmem:[#allocation8 + $0x230] sm:$0xf]  ;;  %v1867_v29 = vld [vmem:[#allocation8 + $0x248] sm:$0xf0]  ;;  %v1864_v30 = vld [vmem:[#allocation8 + $0x234] sm:$0xf]  ;;  %v1393_v32 = vor.u32 %v1808_v23, %v1390_v24 }
  0x2e   :  { %930 = vmatpush.bf16.msra.mxu3 %v1445_v4  ;;  %v1614_v31 = vld [vmem:[#allocation8 + $0x24c] sm:$0xf0]  ;;  %v1360_v33 = vld [vmem:[#allocation8 + $0x38] sm:$0xf]  ;;  %v1804_v34 = vld [vmem:[#allocation8 + $0x50] sm:$0xf0]  ;;  %v1613_v38 = vor.u32 %v1867_v29, %v1612_v27 }
  0x2f   :  { %v1918_v35 = vld [vmem:[%s2208_s2] ss:$0 sm:$0xff]  ;;  %v1801_v36 = vld [vmem:[#allocation8 + $0x3c] sm:$0xf]  ;;  %v1362_v37 = vld [vmem:[#allocation8 + $0x54] sm:$0xf0]  ;;  %v1617_v39 = vor.u32 %v1864_v30, %v1614_v31  ;;  %v1361_v41 = vor.u32 %v1804_v34, %v1360_v33 }
  0x30   :  { %943 = vmatpush.bf16.msra.mxu0 %v1669_v13  ;;  %v1584_v40 = vld [vmem:[#allocation8 + $0x1f8] sm:$0xf]  ;;  %v1797_v43 = vld [vmem:[#allocation8 + $0x18] sm:$0xf0]  ;;  %v1860_v44 = vld [vmem:[#allocation8 + $0x210] sm:$0xf0]  ;;  %v1365_v48 = vor.u32 %v1801_v36, %v1362_v37 }
  0x31   :  { %954 = vmatpush.bf16.msra.mxu1 %v1505_v42  ;;  %967 = vmatpush.bf16.msrb.mxu2 %v1729_v55  ;;  %v1332_v42 = vld [vmem:[#allocation8] sm:$0xf]  ;;  %v1857_v45 = vld [vmem:[#allocation8 + $0x1fc] sm:$0xf]  ;;  %v1586_v46 = vld [vmem:[#allocation8 + $0x214] sm:$0xf0]  ;;  %v1585_v56 = vor.u32 %v1860_v44, %v1584_v40 }
  0x32   :  { %931 = vmatpush.bf16.msra.mxu3 %v1417_v16  ;;  %v1794_v49 = vld [vmem:[#allocation8 + $0x4] sm:$0xf]  ;;  %v1334_v50 = vld [vmem:[#allocation8 + $0x1c] sm:$0xf0]  ;;  %v1536_v51 = vld [vmem:[#allocation8 + $0x190] sm:$0xf]  ;;  %v1589_v57 = vor.u32 %v1857_v45, %v1586_v46  ;;  %v1333_v0 = vor.u32 %v1797_v43, %v1332_v42 }
  0x33   :  { %v1847_v53 = vld [vmem:[#allocation8 + $0x1a8] sm:$0xf0]  ;;  %v1844_v54 = vld [vmem:[#allocation8 + $0x194] sm:$0xf]  ;;  %v1538_v55 = vld [vmem:[#allocation8 + $0x1ac] sm:$0xf0]  ;;  %v1337_v1 = vor.u32 %v1794_v49, %v1334_v50 }
  0x34   :  { %944 = vmatpush.bf16.msra.mxu0 %v1641_v25  ;;  %v1853_v59 = vld [vmem:[#allocation8 + $0x1d8] sm:$0xf0]  ;;  %v1850_v60 = vld [vmem:[#allocation8 + $0x1c4] sm:$0xf]  ;;  %v1558_v62 = vld [vmem:[#allocation8 + $0x1dc] sm:$0xf0]  ;;  %v1537_v6 = vor.u32 %v1847_v53, %v1536_v51  ;;  %v1541_v7 = vor.u32 %v1844_v54, %v1538_v55 }
  0x35   :  { %955 = vmatpush.bf16.msra.mxu1 %v1477_v58  ;;  %968 = vmatpush.bf16.msrb.mxu2 %v1701_v2  ;;  %v1556_v58 = vld [vmem:[#allocation8 + $0x1c0] sm:$0xf]  ;;  %v1760_v63 = vld [vmem:[#allocation8 + $0x350] sm:$0xf]  ;;  %v1903_v2 = vld [vmem:[#allocation8 + $0x368] sm:$0xf0]  ;;  %v1561_v13 = vor.u32 %v1850_v60, %v1558_v62 }
  0x36   :  { %932 = vmatpush.bf16.msra.mxu3 %v1389_v28  ;;  %v1900_v3 = vld [vmem:[#allocation8 + $0x354] sm:$0xf]  ;;  %v1762_v4 = vld [vmem:[#allocation8 + $0x36c] sm:$0xf0]  ;;  %v1557_v10 = vor.u32 %v1853_v59, %v1556_v58  ;;  %v1837_v11 = vld [vmem:[#allocation8 + $0x15c] sm:$0xf] }
  0x37   :  { %v1840_v9 = vld [vmem:[#allocation8 + $0x170] sm:$0xf0]  ;;  %v1510_v12 = vld [vmem:[#allocation8 + $0x174] sm:$0xf0]  ;;  %v1765_v15 = vor.u32 %v1900_v3, %v1762_v4  ;;  %v1893_v19 = vld [vmem:[#allocation8 + $0x31c] sm:$0xf] }
  0x38   :  { %945 = vmatpush.bf16.msra.mxu0 %v1613_v38  ;;  %v1732_v16 = vld [vmem:[#allocation8 + $0x318] sm:$0xf]  ;;  %v1896_v18 = vld [vmem:[#allocation8 + $0x330] sm:$0xf0]  ;;  %v1513_v22 = vor.u32 %v1837_v11, %v1510_v12  ;;  %v1480_v23 = vld [vmem:[#allocation8 + $0x120] sm:$0xf] }
  0x39   :  { %956 = vmatpush.bf16.msra.mxu1 %v1449_v8  ;;  %969 = vmatpush.bf16.msrb.mxu2 %v1673_v14  ;;  %v1508_v8 = vld [vmem:[#allocation8 + $0x158] sm:$0xf]  ;;  %v1761_v14 = vor.u32 %v1903_v2, %v1760_v63  ;;  %v1833_v24 = vld [vmem:[#allocation8 + $0x138] sm:$0xf0]  ;;  %v1830_v25 = vld [vmem:[#allocation8 + $0x124] sm:$0xf]  ;;  %v1733_v27 = vor.u32 %v1896_v18, %v1732_v16 }
  0x3a   :  { %933 = vmatpush.bf16.msra.mxu3 %v1361_v41  ;;  %v1509_v21 = vor.u32 %v1840_v9, %v1508_v8  ;;  %v1704_v29 = vld [vmem:[#allocation8 + $0x2e0] sm:$0xf]  ;;  %v1889_v30 = vld [vmem:[#allocation8 + $0x2f8] sm:$0xf0]  ;;  %v1886_v31 = vld [vmem:[#allocation8 + $0x2e4] sm:$0xf]  ;;  %v1481_v33 = vor.u32 %v1833_v24, %v1480_v23 }
  0x3b   :  { %v1826_v36 = vld [vmem:[#allocation8 + $0x100] sm:$0xf0]  ;;  %v1823_v37 = vld [vmem:[#allocation8 + $0xec] sm:$0xf]  ;;  %v1454_v38 = vld [vmem:[#allocation8 + $0x104] sm:$0xf0] }
  0x3c   :  { %946 = vmatpush.bf16.msra.mxu0 %v1585_v56  ;;  %v1676_v41 = vld [vmem:[#allocation8 + $0x2a8] sm:$0xf]  ;;  %v1882_v42 = vld [vmem:[#allocation8 + $0x2c0] sm:$0xf0]  ;;  %v1879_v43 = vld [vmem:[#allocation8 + $0x2ac] sm:$0xf]  ;;  %v1457_v46 = vor.u32 %v1823_v37, %v1454_v38 }
  0x3d   :  { %957 = vmatpush.bf16.msra.mxu1 %v1421_v20  ;;  %970 = vmatpush.bf16.msrb.mxu2 %v1645_v26  ;;  %v1734_v20 = vld [vmem:[#allocation8 + $0x334] sm:$0xf0]  ;;  %v1482_v26 = vld [vmem:[#allocation8 + $0x13c] sm:$0xf0]  ;;  %v1678_v44 = vld [vmem:[#allocation8 + $0x2c4] sm:$0xf0]  ;;  %v1677_v51 = vor.u32 %v1882_v42, %v1676_v41 }
  0x3e   :  { %934 = vmatpush.bf16.msra.mxu3 %v1333_v0  ;;  %v1737_v28 = vor.u32 %v1893_v19, %v1734_v20  ;;  %v1485_v34 = vor.u32 %v1830_v25, %v1482_v26  ;;  %v1816_v49 = vld [vmem:[#allocation8 + $0xb4] sm:$0xf]  ;;  %v1426_v50 = vld [vmem:[#allocation8 + $0xcc] sm:$0xf0]  ;;  %v1396_v55 = vld [vmem:[#allocation8 + $0x78] sm:$0xf] }
  0x3f   :  { %v1429_v54 = vor.u32 %v1816_v49, %v1426_v50  ;;  %v1812_v56 = vld [vmem:[#allocation8 + $0x90] sm:$0xf0]  ;;  %v1398_v58 = vld [vmem:[#allocation8 + $0x94] sm:$0xf0]  ;;  %v1875_v62 = vld [vmem:[#allocation8 + $0x288] sm:$0xf0] }
  0x40   :  { %947 = vmatpush.bf16.msra.mxu0 %v1557_v10  ;;  %v1397_v59 = vor.u32 %v1812_v56, %v1396_v55  ;;  %v1872_v0 = vld [vmem:[#allocation8 + $0x274] sm:$0xf]  ;;  %v1368_v3 = vld [vmem:[#allocation8 + $0x40] sm:$0xf]  ;;  %v1805_v4 = vld [vmem:[#allocation8 + $0x58] sm:$0xf0] }
  0x41   :  { %958 = vmatpush.bf16.msra.mxu1 %v1393_v32  ;;  %971 = vmatpush.bf16.msrb.mxu2 %v1617_v39  ;;  %v1706_v32 = vld [vmem:[#allocation8 + $0x2fc] sm:$0xf0]  ;;  %v1705_v39 = vor.u32 %v1889_v30, %v1704_v29  ;;  %v1620_v9 = vld [vmem:[#allocation8 + $0x238] sm:$0xf]  ;;  %v1868_v10 = vld [vmem:[#allocation8 + $0x250] sm:$0xf0] }
  0x42   :  { %979 = vmatpush.bf16.msrb.mxu3 %v1537_v6  ;;  %v1709_v40 = vor.u32 %v1886_v31, %v1706_v32  ;;  %v1802_v6 = vld [vmem:[#allocation8 + $0x44] sm:$0xf]  ;;  %v1621_v11 = vor.u32 %v1868_v10, %v1620_v9  ;;  %v1865_v12 = vld [vmem:[#allocation8 + $0x23c] sm:$0xf]  ;;  %v1795_v18 = vld [vmem:[#allocation8 + $0xc] sm:$0xf] }
  0x43   :  { %v1798_v16 = vld [vmem:[#allocation8 + $0x20] sm:$0xf0]  ;;  %v1342_v19 = vld [vmem:[#allocation8 + $0x24] sm:$0xf0]  ;;  %v1594_v25 = vld [vmem:[#allocation8 + $0x21c] sm:$0xf0] }
  0x44   :  { %992 = vmatpush.bf16.msrb.mxu0 %v1761_v14  ;;  %v1345_v20 = vor.u32 %v1795_v18, %v1342_v19  ;;  %v1858_v24 = vld [vmem:[#allocation8 + $0x204] sm:$0xf]  ;;  %v1851_v30 = vld [vmem:[#allocation8 + $0x1cc] sm:$0xf]  ;;  %v1566_v31 = vld [vmem:[#allocation8 + $0x1e4] sm:$0xf0] }
  0x45   :  { %959 = vmatpush.bf16.msra.mxu1 %v1365_v48  ;;  %972 = vmatpush.bf16.msrb.mxu2 %v1589_v57  ;;  %v1819_v48 = vld [vmem:[#allocation8 + $0xc8] sm:$0xf0]  ;;  %v1809_v57 = vld [vmem:[#allocation8 + $0x7c] sm:$0xf]  ;;  %v1597_v26 = vor.u32 %v1858_v24, %v1594_v25  ;;  %v1569_v32 = vor.u32 %v1851_v30, %v1566_v31  ;;  %v1848_v38 = vld [vmem:[#allocation8 + $0x1b0] sm:$0xf0] }
  0x46   :  { %980 = vmatpush.bf16.msrb.mxu3 %v1509_v21  ;;  %v1401_v60 = vor.u32 %v1809_v57, %v1398_v58  ;;  %v1592_v21 = vld [vmem:[#allocation8 + $0x200] sm:$0xf]  ;;  %v1770_v55 = vld [vmem:[#allocation8 + $0x374] sm:$0xf0]  ;;  %v1460_v9 = vld [vmem:[#allocation8 + $0xf0] sm:$0xf] }
  0x47   :  { %v1518_v49 = vld [vmem:[#allocation8 + $0x17c] sm:$0xf0]  ;;  %v1827_v10 = vld [vmem:[#allocation8 + $0x108] sm:$0xf0]  ;;  %v1714_v19 = vld [vmem:[#allocation8 + $0x304] sm:$0xf0] }
  0x48   :  { %993 = vmatpush.bf16.msrb.mxu0 %v1733_v27  ;;  %v1564_v27 = vld [vmem:[#allocation8 + $0x1c8] sm:$0xf]  ;;  %v1887_v18 = vld [vmem:[#allocation8 + $0x2ec] sm:$0xf]  ;;  %v1817_v24 = vld [vmem:[#allocation8 + $0xbc] sm:$0xf] }
  0x49   :  { %960 = vmatpush.bf16.msra.mxu1 %v1337_v1  ;;  %973 = vmatpush.bf16.msrb.mxu2 %v1561_v13  ;;  %v1650_v1 = vld [vmem:[#allocation8 + $0x28c] sm:$0xf0]  ;;  %v1622_v13 = vld [vmem:[#allocation8 + $0x254] sm:$0xf0]  ;;  %v1880_v30 = vld [vmem:[#allocation8 + $0x2b4] sm:$0xf] }
  0x4a   :  { %981 = vmatpush.bf16.msrb.mxu3 %v1481_v33  ;;  %v1653_v2 = vor.u32 %v1872_v0, %v1650_v1  ;;  %v1625_v14 = vor.u32 %v1865_v12, %v1622_v13  ;;  %v143_v33 = vld [vmem:[%s2210_s4] sm:$0x3]  ;;  %v1434_v25 = vld [vmem:[#allocation8 + $0xd4] sm:$0xf0]  ;;  %s2110_s4 = smov [#allocation11]   ;;  %s1279_s10 = sshll.u32 %s2213_s7, 4  ;;  %s1280_s10 = int_to_ptr.hbm [resolvable:$true] %s1279_s10 }
  0x4b   :  { %v146_v42 = vperm.slane %v143_v33, 1  ;;  %v1462_v12 = vld [vmem:[#allocation8 + $0x10c] sm:$0xf0]  ;;  %s1277_s30 = sshll.u32 %s2110_s4, 4  ;;  %s1278_s30 = int_to_ptr.vmem [resolvable:$true] %s1277_s30 }
  0x4c   :  { %994 = vmatpush.bf16.msrb.mxu0 %v1705_v39  ;;  %v1845_v39 = vld [vmem:[#allocation8 + $0x19c] sm:$0xf]  ;;  %v1686_v31 = vld [vmem:[#allocation8 + $0x2cc] sm:$0xf0] }
  0x50   :  { %995 = vmatpush.bf16.msrb.mxu0 %v1677_v51  ;;  %v1768_v51 = vld [vmem:[#allocation8 + $0x358] sm:$0xf] }
  0x99   :  { %v129_v47 = vpop.f32.mrf.mxu1 }
  0x9a   :  { %v130_v52 = vadd.f32 %v1918_v35, %v129_v47  ;;  %v1452_v35 = vld [vmem:[#allocation8 + $0xe8] sm:$0xf]  ;;  %v1424_v47 = vld [vmem:[#allocation8 + $0xb0] sm:$0xf] }
  0x9b   :  { %v1453_v45 = vor.u32 %v1826_v36, %v1452_v35  ;;  %v1425_v53 = vor.u32 %v1819_v48, %v1424_v47  ;;  %v1544_v36 = vld [vmem:[#allocation8 + $0x198] sm:$0xf]  ;;  %v1841_v47 = vld [vmem:[#allocation8 + $0x178] sm:$0xf0]  ;;  %v1838_v48 = vld [vmem:[#allocation8 + $0x164] sm:$0xf] }
  0x9c   :  { %v133_v61 = vmax.f32 %v130_v52, 0.0  ;;  %v1681_v52 = vor.u32 %v1879_v43, %v1678_v44  ;;  %v1545_v43 = vor.u32 %v1848_v38, %v1544_v36  ;;  %v1521_v58 = vor.u32 %v1838_v48, %v1518_v49  ;;  %v1810_v36 = vld [vmem:[#allocation8 + $0x84] sm:$0xf]  ;;  %v1803_v49 = vld [vmem:[#allocation8 + $0x4c] sm:$0xf] }
  0x9d   :  { %982 = vmatpush.bf16.msrb.mxu3 %v1453_v45  ;;  %v1516_v45 = vld [vmem:[#allocation8 + $0x160] sm:$0xf]  ;;  %v1806_v48 = vld [vmem:[#allocation8 + $0x60] sm:$0xf0] }
  0x9e   :  { %v134_v5 = vpack.c.bf16 %v133_v61, %v133_v61  ;;  %v1648_v61 = vld [vmem:[#allocation8 + $0x270] sm:$0xf]  ;;  %v1517_v57 = vor.u32 %v1841_v47, %v1516_v45  ;;  %v1376_v47 = vld [vmem:[#allocation8 + $0x48] sm:$0xf] }
  0x9f   :  { %v1649_v63 = vor.u32 %v1875_v62, %v1648_v61  ;;  %v1831_v62 = vld [vmem:[#allocation8 + $0x12c] sm:$0xf] }
  0xa0   :  { %1328 = vmatmul.msk.bf16.vlgmr.msrb.gmra.mxu1 %vm189_vm1, %v134_v5  ;;  %1329 = vmatmul.msk.bf16.vlgmr.msra.gmra.mxu2 %vm189_vm1, %v134_v5  ;;  %v1369_v5 = vor.u32 %v1805_v4, %v1368_v3  ;;  %v1897_v4 = vld [vmem:[#allocation8 + $0x338] sm:$0xf0] }
  0xa1   :  { %v131_v17 = vpop.f32.mrf.mxu1  ;;  %1005 = vmatpush.bf16.msrb.mxu1 %v1541_v7  ;;  %1018 = vmatpush.bf16.msra.mxu2 %v1765_v15  ;;  %v1370_v7 = vld [vmem:[#allocation8 + $0x5c] sm:$0xf0]  ;;  %v1340_v15 = vld [vmem:[#allocation8 + $0x8] sm:$0xf] }
  0xa2   :  { %983 = vmatpush.bf16.msrb.mxu3 %v1425_v53  ;;  %996 = vmatpush.bf16.msrb.mxu0 %v1649_v63  ;;  %v1373_v8 = vor.u32 %v1802_v6, %v1370_v7  ;;  %v1341_v17 = vor.u32 %v1798_v16, %v1340_v15  ;;  %v1904_v53 = vld [vmem:[#allocation8 + $0x370] sm:$0xf0]  ;;  %v1490_v63 = vld [vmem:[#allocation8 + $0x144] sm:$0xf0]  ;;  %v1742_v6 = vld [vmem:[#allocation8 + $0x33c] sm:$0xf0] }
  0xa3   :  { %v1769_v0 = vor.u32 %v1904_v53, %v1768_v51  ;;  %v1712_v16 = vld [vmem:[#allocation8 + $0x2e8] sm:$0xf]  ;;  %v1628_v53 = vld [vmem:[#allocation8 + $0x240] sm:$0xf] }
  0xa5   :  { %1006 = vmatpush.bf16.msrb.mxu1 %v1513_v22  ;;  %1019 = vmatpush.bf16.msra.mxu2 %v1737_v28  ;;  %v1861_v22 = vld [vmem:[#allocation8 + $0x218] sm:$0xf0]  ;;  %v1854_v28 = vld [vmem:[#allocation8 + $0x1e0] sm:$0xf0] }
  0xa6   :  { %984 = vmatpush.bf16.msrb.mxu3 %v1397_v59  ;;  %997 = vmatpush.bf16.msrb.mxu0 %v1621_v11  ;;  %v1593_v23 = vor.u32 %v1861_v22, %v1592_v21  ;;  %v1565_v29 = vor.u32 %v1854_v28, %v1564_v27  ;;  %v1488_v59 = vld [vmem:[#allocation8 + $0x128] sm:$0xf]  ;;  %v1824_v11 = vld [vmem:[#allocation8 + $0xf4] sm:$0xf]  ;;  %v1432_v22 = vld [vmem:[#allocation8 + $0xb8] sm:$0xf]  ;;  %v1717_v27 = vor.u32 %v1887_v18, %v1714_v19 }
  0xa7   :  { %v1465_v21 = vor.u32 %v1824_v11, %v1462_v12  ;;  %v1684_v28 = vld [vmem:[#allocation8 + $0x2b0] sm:$0xf]  ;;  %v1776_v19 = vld [vmem:[#allocation8 + $0x360] sm:$0xf] }
  0xa8   :  { %v1574_v18 = vld [vmem:[#allocation8 + $0x1ec] sm:$0xf0] }
  0xa9   :  { %1007 = vmatpush.bf16.msrb.mxu1 %v1485_v34  ;;  %1020 = vmatpush.bf16.msra.mxu2 %v1709_v40  ;;  %v145_v34 = vperm.slane %v143_v33, 0  ;;  %v1546_v40 = vld [vmem:[#allocation8 + $0x1b4] sm:$0xf0]  ;;  %v1437_v33 = vor.u32 %v1817_v24, %v1434_v25  ;;  %v1496_v24 = vld [vmem:[#allocation8 + $0x130] sm:$0xf] }
  0xaa   :  { %985 = vmatpush.bf16.msrb.mxu3 %v1369_v5  ;;  %998 = vmatpush.bf16.msrb.mxu0 %v1593_v23  ;;  %v1549_v44 = vor.u32 %v1845_v39, %v1546_v40  ;;  %v1894_v5 = vld [vmem:[#allocation8 + $0x324] sm:$0xf]  ;;  %v1820_v23 = vld [vmem:[#allocation8 + $0xd0] sm:$0xf0]  ;;  %v1689_v39 = vor.u32 %v1880_v30, %v1686_v31  ;;  %v1656_v40 = vld [vmem:[#allocation8 + $0x278] sm:$0xf] }
  0xab   :  { %v1745_v15 = vor.u32 %v1894_v5, %v1742_v6  ;;  %v1862_v5 = vld [vmem:[#allocation8 + $0x220] sm:$0xf0]  ;;  %v1859_v6 = vld [vmem:[#allocation8 + $0x20c] sm:$0xf]  ;;  %v1468_v30 = vld [vmem:[#allocation8 + $0xf8] sm:$0xf] }
  0xac   :  { %v1835_v25 = vld [vmem:[#allocation8 + $0x148] sm:$0xf0]  ;;  %v1828_v31 = vld [vmem:[#allocation8 + $0x110] sm:$0xf0] }
  0xad   :  { %1008 = vmatpush.bf16.msrb.mxu1 %v1457_v46  ;;  %1021 = vmatpush.bf16.msra.mxu2 %v1681_v52 }
  0xae   :  { %986 = vmatpush.bf16.msrb.mxu3 %v1341_v17  ;;  %999 = vmatpush.bf16.msrb.mxu0 %v1565_v29  ;;  %v1890_v17 = vld [vmem:[#allocation8 + $0x300] sm:$0xf0]  ;;  %v1883_v29 = vld [vmem:[#allocation8 + $0x2c8] sm:$0xf0] }
  0xaf   :  { %v1685_v38 = vor.u32 %v1883_v29, %v1684_v28  ;;  %v1898_v28 = vld [vmem:[#allocation8 + $0x340] sm:$0xf0]  ;;  %v1497_v29 = vor.u32 %v1835_v25, %v1496_v24 }
  0xb1   :  { %1009 = vmatpush.bf16.msrb.mxu1 %v1429_v54  ;;  %1022 = vmatpush.bf16.msra.mxu2 %v1653_v2  ;;  %v1901_v54 = vld [vmem:[#allocation8 + $0x35c] sm:$0xf]  ;;  %v1740_v2 = vld [vmem:[#allocation8 + $0x320] sm:$0xf] }
  0xb2   :  { %v1773_v1 = vor.u32 %v1901_v54, %v1770_v55  ;;  %v1869_v54 = vld [vmem:[#allocation8 + $0x258] sm:$0xf0]  ;;  %v1866_v55 = vld [vmem:[#allocation8 + $0x244] sm:$0xf] }
  0xb5   :  { %1010 = vmatpush.bf16.msrb.mxu1 %v1401_v60  ;;  %1023 = vmatpush.bf16.msra.mxu2 %v1625_v14  ;;  %v1834_v60 = vld [vmem:[#allocation8 + $0x140] sm:$0xf0]  ;;  %v1741_v14 = vor.u32 %v1897_v4, %v1740_v2  ;;  %v1849_v2 = vld [vmem:[#allocation8 + $0x1b8] sm:$0xf0]  ;;  %v1600_v4 = vld [vmem:[#allocation8 + $0x208] sm:$0xf] }
  0xb6   :  { %v1489_v7 = vor.u32 %v1834_v60, %v1488_v59  ;;  %v1348_v59 = vld [vmem:[#allocation8 + $0x10] sm:$0xf]  ;;  %v1799_v60 = vld [vmem:[#allocation8 + $0x28] sm:$0xf0]  ;;  %v1601_v11 = vor.u32 %v1862_v5, %v1600_v4 }
  0xb9   :  { %1011 = vmatpush.bf16.msrb.mxu1 %v1373_v8  ;;  %1024 = vmatpush.bf16.msra.mxu2 %v1597_v26  ;;  %v1493_v8 = vor.u32 %v1831_v62, %v1490_v63  ;;  %v1713_v26 = vor.u32 %v1890_v17, %v1712_v16  ;;  %v1350_v62 = vld [vmem:[#allocation8 + $0x2c] sm:$0xf0]  ;;  %v1629_v63 = vor.u32 %v1869_v54, %v1628_v53  ;;  %v1855_v16 = vld [vmem:[#allocation8 + $0x1e8] sm:$0xf0]  ;;  %v1852_v17 = vld [vmem:[#allocation8 + $0x1d4] sm:$0xf] }
  0xba   :  { %v1870_v53 = vld [vmem:[#allocation8 + $0x260] sm:$0xf0] }
  0xbd   :  { %1012 = vmatpush.bf16.msrb.mxu1 %v1345_v20  ;;  %1025 = vmatpush.bf16.msra.mxu2 %v1569_v32  ;;  %v1461_v20 = vor.u32 %v1827_v10, %v1460_v9  ;;  %v1433_v32 = vor.u32 %v1820_v23, %v1432_v22  ;;  %v1577_v23 = vor.u32 %v1852_v17, %v1574_v18 }
 0x11d   :  { %v202_v35 = vpop.f32.mrf.mxu1 }
 0x11e   :  { %v203_v37 = vadd.f32 %v202_v35, %v145_v34  ;;  %v1404_v34 = vld [vmem:[#allocation8 + $0x80] sm:$0xf]  ;;  %v1813_v35 = vld [vmem:[#allocation8 + $0x98] sm:$0xf0] }
 0x120   :  { %v219_v41 = vmax.f32 %v203_v37, 0.0  ;;  %v1406_v37 = vld [vmem:[#allocation8 + $0x9c] sm:$0xf0] }
 0x121   :  { %v1409_v45 = vor.u32 %v1810_v36, %v1406_v37  ;;  %v1440_v36 = vld [vmem:[#allocation8 + $0xc0] sm:$0xf]  ;;  %v1821_v37 = vld [vmem:[#allocation8 + $0xd8] sm:$0xf0] }
 0x122   :  { %v2175_v46 = vpack.c.bf16 %v219_v41, %v219_v41  ;;  %v1876_v41 = vld [vmem:[#allocation8 + $0x290] sm:$0xf0] }
 0x123   :  { %v215_v50 = vpop.f32.mrf.mxu2  ;;  %v1657_v51 = vor.u32 %v1876_v41, %v1656_v40  ;;  %v1884_v40 = vld [vmem:[#allocation8 + $0x2d0] sm:$0xf0]  ;;  %v1441_v41 = vor.u32 %v1821_v37, %v1440_v36 }
 0x124   :  { %v216_v52 = vadd.f32 %v215_v50, %v146_v42  ;;  %935 = vmatmul.bf16.vlgmr.msra.gmra.mxu3 %v2175_v46  ;;  %961 = vmatmul.bf16.vlgmr.msra.gmra.mxu1 %v2175_v46  ;;  %v1873_v42 = vld [vmem:[#allocation8 + $0x27c] sm:$0xf]  ;;  %v1378_v50 = vld [vmem:[#allocation8 + $0x64] sm:$0xf0] }
 0x125   :  { %1031 = vmatpush.bf16.msra.mxu3 %v1545_v43  ;;  %v204_v56 = vpop.f32.mrf.mxu1  ;;  %1057 = vmatpush.bf16.msra.mxu1 %v1549_v44  ;;  %v1658_v43 = vld [vmem:[#allocation8 + $0x294] sm:$0xf0]  ;;  %v1405_v44 = vor.u32 %v1813_v35, %v1404_v34  ;;  %v1891_v34 = vld [vmem:[#allocation8 + $0x308] sm:$0xf0]  ;;  %v1469_v35 = vor.u32 %v1828_v31, %v1468_v30 }
 0x126   :  { %v220_v61 = vmax.f32 %v216_v52, 0.0  ;;  %v1661_v52 = vor.u32 %v1873_v42, %v1658_v43  ;;  %v1630_v56 = vld [vmem:[#allocation8 + $0x25c] sm:$0xf0]  ;;  %v1412_v42 = vld [vmem:[#allocation8 + $0x88] sm:$0xf] }
 0x127   :  { %v1814_v43 = vld [vmem:[#allocation8 + $0xa0] sm:$0xf0] }
 0x128   :  { %v2179_v3 = vpack.c.bf16 %v220_v61, %v220_v61  ;;  %v1796_v61 = vld [vmem:[#allocation8 + $0x14] sm:$0xf] }
 0x129   :  { %1032 = vmatpush.bf16.msra.mxu3 %v1517_v57  ;;  %1058 = vmatpush.bf16.msra.mxu1 %v1521_v58  ;;  %v1377_v57 = vor.u32 %v1806_v48, %v1376_v47  ;;  %v1381_v58 = vor.u32 %v1803_v49, %v1378_v50  ;;  %v1353_v9 = vor.u32 %v1796_v61, %v1350_v62  ;;  %v1877_v47 = vld [vmem:[#allocation8 + $0x298] sm:$0xf0]  ;;  %v1384_v49 = vld [vmem:[#allocation8 + $0x50] sm:$0xf]  ;;  %v1807_v50 = vld [vmem:[#allocation8 + $0x68] sm:$0xf0] }
 0x12a   :  { %948 = vmatmul.bf16.vlgmr.msra.gmra.mxu0 %v2179_v3  ;;  %974 = vmatmul.bf16.vlgmr.msrb.gmra.mxu2 %v2179_v3  ;;  %v1413_v48 = vor.u32 %v1814_v43, %v1412_v42  ;;  %v1385_v54 = vor.u32 %v1807_v50, %v1384_v49  ;;  %v1580_v62 = vld [vmem:[#allocation8 + $0x1d8] sm:$0xf] }
 0x12b   :  { %1044 = vmatpush.bf16.msra.mxu0 %v1769_v0  ;;  %v217_v13 = vpop.f32.mrf.mxu2  ;;  %1070 = vmatpush.bf16.msrb.mxu2 %v1773_v1  ;;  %v1633_v0 = vor.u32 %v1866_v55, %v1630_v56  ;;  %v1552_v1 = vld [vmem:[#allocation8 + $0x1a0] sm:$0xf]  ;;  %v1356_v55 = vld [vmem:[#allocation8 + $0x18] sm:$0xf]  ;;  %v1800_v56 = vld [vmem:[#allocation8 + $0x30] sm:$0xf0] }
 0x12c   :  { %v1553_v10 = vor.u32 %v1849_v2, %v1552_v1  ;;  %v1524_v13 = vld [vmem:[#allocation8 + $0x168] sm:$0xf]  ;;  %v2193_v2 = vld [vmem:[#allocation10] sm:$0x7f] }
 0x12d   :  { %1033 = vmatpush.bf16.msra.mxu3 %v1489_v7  ;;  %1059 = vmatpush.bf16.msra.mxu1 %v1493_v8  ;;  %v1602_v7 = vld [vmem:[#allocation8 + $0x224] sm:$0xf0]  ;;  %v1349_v8 = vor.u32 %v1799_v60, %v1348_v59  ;;  %v1863_v59 = vld [vmem:[#allocation8 + $0x228] sm:$0xf0]  ;;  %v1357_v60 = vor.u32 %v1800_v56, %v1356_v55  ;;  %v1111_v4 = vperm.slane %v2193_v2, 0 }
 0x12e   :  { %v1605_v12 = vor.u32 %v1859_v6, %v1602_v7 }
 0x12f   :  { %1045 = vmatpush.bf16.msra.mxu0 %v1741_v14  ;;  %1071 = vmatpush.bf16.msrb.mxu2 %v1745_v15  ;;  %v1842_v14 = vld [vmem:[#allocation8 + $0x180] sm:$0xf0]  ;;  %v1572_v15 = vld [vmem:[#allocation8 + $0x1d0] sm:$0xf] }
 0x130   :  { %v1573_v22 = vor.u32 %v1855_v16, %v1572_v15 }
 0x131   :  { %1034 = vmatpush.bf16.msra.mxu3 %v1461_v20  ;;  %1060 = vmatpush.bf16.msra.mxu1 %v1465_v21  ;;  %v1905_v20 = vld [vmem:[#allocation8 + $0x378] sm:$0xf0]  ;;  %v1525_v21 = vor.u32 %v1842_v14, %v1524_v13 }
 0x133   :  { %1046 = vmatpush.bf16.msra.mxu0 %v1713_v26  ;;  %1072 = vmatpush.bf16.msrb.mxu2 %v1717_v27  ;;  %v1777_v26 = vor.u32 %v1905_v20, %v1776_v19  ;;  %v1748_v27 = vld [vmem:[#allocation8 + $0x328] sm:$0xf]  ;;  %v1113_v20 = vperm.slane %v2193_v2, 2 }
 0x134   :  { %987 = vmatmul.bf16.vlgmr.msrb.gmra.mxu3 %v2175_v46  ;;  %1013 = vmatmul.bf16.vlgmr.msrb.gmra.mxu1 %v2175_v46 }
 0x135   :  { %1035 = vmatpush.bf16.msra.mxu3 %v1433_v32  ;;  %1061 = vmatpush.bf16.msra.mxu1 %v1437_v33  ;;  %v1749_v32 = vor.u32 %v1898_v28, %v1748_v27  ;;  %v1720_v33 = vld [vmem:[#allocation8 + $0x2f0] sm:$0xf] }
 0x137   :  { %1047 = vmatpush.bf16.msra.mxu0 %v1685_v38  ;;  %1073 = vmatpush.bf16.msrb.mxu2 %v1689_v39  ;;  %v1721_v38 = vor.u32 %v1891_v34, %v1720_v33  ;;  %v1692_v39 = vld [vmem:[#allocation8 + $0x2b8] sm:$0xf] }
 0x139   :  { %1036 = vmatpush.bf16.msra.mxu3 %v1405_v44  ;;  %1062 = vmatpush.bf16.msra.mxu1 %v1409_v45  ;;  %v1693_v44 = vor.u32 %v1884_v40, %v1692_v39  ;;  %v1664_v45 = vld [vmem:[#allocation8 + $0x280] sm:$0xf] }
 0x13a   :  { %1000 = vmatmul.bf16.vlgmr.msrb.gmra.mxu0 %v2179_v3  ;;  %1026 = vmatmul.bf16.vlgmr.msra.gmra.mxu2 %v2179_v3 }
 0x13b   :  { %1048 = vmatpush.bf16.msra.mxu0 %v1657_v51  ;;  %1074 = vmatpush.bf16.msrb.mxu2 %v1661_v52  ;;  %v1665_v51 = vor.u32 %v1877_v47, %v1664_v45  ;;  %v1636_v52 = vld [vmem:[#allocation8 + $0x248] sm:$0xf] }
 0x13d   :  { %1037 = vmatpush.bf16.msra.mxu3 %v1377_v57  ;;  %1063 = vmatpush.bf16.msra.mxu1 %v1381_v58  ;;  %v1637_v57 = vor.u32 %v1870_v53, %v1636_v52  ;;  %v1608_v58 = vld [vmem:[#allocation8 + $0x210] sm:$0xf]  ;;  %v1115_v53 = vperm.slane %v2193_v2, 4 }
 0x13e   :  { %v1609_v61 = vor.u32 %v1863_v59, %v1608_v58 }
 0x13f   :  { %1049 = vmatpush.bf16.msra.mxu0 %v1629_v63  ;;  %1075 = vmatpush.bf16.msrb.mxu2 %v1633_v0  ;;  %v1856_v63 = vld [vmem:[#allocation8 + $0x1f0] sm:$0xf0] }
 0x140   :  { %v1581_v0 = vor.u32 %v1856_v63, %v1580_v62 }
 0x141   :  { %1038 = vmatpush.bf16.msra.mxu3 %v1349_v8  ;;  %1064 = vmatpush.bf16.msra.mxu1 %v1353_v9 }
 0x143   :  { %1050 = vmatpush.bf16.msra.mxu0 %v1601_v11  ;;  %1076 = vmatpush.bf16.msrb.mxu2 %v1605_v12  ;;  %v1112_v11 = vperm.slane %v2193_v2, 1 }
 0x144   :  { %1039 = vmatmul.bf16.vlgmr.msra.gmra.mxu3 %v2175_v46  ;;  %1065 = vmatmul.bf16.vlgmr.msra.gmra.mxu1 %v2175_v46 }
 0x145   :  { %1083 = vmatpush.bf16.msrb.mxu3 %v1553_v10 }
 0x147   :  { %1051 = vmatpush.bf16.msra.mxu0 %v1573_v22  ;;  %1077 = vmatpush.bf16.msrb.mxu2 %v1577_v23 }
 0x149   :  { %1084 = vmatpush.bf16.msrb.mxu3 %v1525_v21 }
 0x14a   :  { %1052 = vmatmul.bf16.vlgmr.msra.gmra.mxu0 %v2179_v3  ;;  %1078 = vmatmul.bf16.vlgmr.msrb.gmra.mxu2 %v2179_v3 }
 0x14b   :  { %1096 = vmatpush.bf16.msrb.mxu0 %v1777_v26 }
 0x14d   :  { %1085 = vmatpush.bf16.msrb.mxu3 %v1497_v29  ;;  %v1114_v29 = vperm.slane %v2193_v2, 3 }
 0x14f   :  { %1097 = vmatpush.bf16.msrb.mxu0 %v1749_v32 }
 0x151   :  { %1086 = vmatpush.bf16.msrb.mxu3 %v1469_v35 }
 0x153   :  { %1098 = vmatpush.bf16.msrb.mxu0 %v1721_v38 }
 0x155   :  { %1087 = vmatpush.bf16.msrb.mxu3 %v1441_v41 }
 0x157   :  { %1099 = vmatpush.bf16.msrb.mxu0 %v1693_v44 }
 0x159   :  { %1088 = vmatpush.bf16.msrb.mxu3 %v1413_v48 }
 0x15b   :  { %1100 = vmatpush.bf16.msrb.mxu0 %v1665_v51 }
 0x15d   :  { %1089 = vmatpush.bf16.msrb.mxu3 %v1385_v54 }
 0x15f   :  { %1101 = vmatpush.bf16.msrb.mxu0 %v1637_v57 }
 0x161   :  { %1090 = vmatpush.bf16.msrb.mxu3 %v1357_v60 }
 0x163   :  { %1102 = vmatpush.bf16.msrb.mxu0 %v1609_v61 }
 0x164   :  { %1091 = vmatmul.bf16.vlgmr.msrb.gmra.mxu3 %v2175_v46 }
 0x167   :  { %1103 = vmatpush.bf16.msrb.mxu0 %v1581_v0 }
 0x16a   :  { %1104 = vmatmul.bf16.vlgmr.msrb.gmra.mxu0 %v2179_v3 }
 0x1a1   :  { %v962_v1 = vpop.f32.mrf.mxu1 }
 0x1a7   :  { %v936_v5 = vpop.f32.mrf.mxu3  ;;  %v949_v6 = vpop.f32.mrf.mxu0 }
 0x1a8   :  { %v950_v7 = vadd.f32 %v949_v6, %v936_v5 }
 0x1a9   :  { %v964_v8 = vpop.f32.mrf.mxu1 }
 0x1aa   :  { %v1125_v9 = vadd.f32 %v1111_v4, %v950_v7 }
 0x1ac   :  { %v1778_v10 = vmul.f32 -1.442695, %v1125_v9  ;;  %v1116_v9 = vperm.slane %v2193_v2, 5 }
 0x1ad   :  { %v975_v12 = vpop.f32.mrf.mxu2 }
 0x1ae   :  { %1919 = vpow2.f32 %v1778_v10  ;;  %v976_v13 = vadd.f32 %v975_v12, %v962_v1 }
 0x1af   :  { %v938_v46 = vpop.f32.mrf.mxu3  ;;  %v951_v14 = vpop.f32.mrf.mxu0 }
 0x1b0   :  { %v1126_v15 = vadd.f32 %v1112_v11, %v976_v13 }
 0x1b1   :  { %v1014_v3 = vpop.f32.mrf.mxu1 }
 0x1b2   :  { %v1779_v16 = vmul.f32 -1.442695, %v1126_v15 }
 0x1b4   :  { %v1920_v17 = vpop.eup %1919  ;;  %1921 = vpow2.f32 %v1779_v16 }
 0x1b5   :  { %v1153_v18 = vadd.f32 1.0, %v1920_v17  ;;  %v977_v19 = vpop.f32.mrf.mxu2 }
 0x1b7   :  { %1923 = vrcp.f32 %v1153_v18  ;;  %v988_v21 = vpop.f32.mrf.mxu3  ;;  %v1001_v22 = vpop.f32.mrf.mxu0  ;;  %v1171_v38 = vand.u32 2147483648, %v1153_v18  ;;  %v1169_v41 = vand.u32 2147483647, %v1153_v18  ;;  %vm1165_vm3 = vweird.f32 %v1153_v18 }
 0x1b8   :  { %v1002_v23 = vadd.f32 %v1001_v22, %v988_v21 }
 0x1b9   :  { %v1016_v24 = vpop.f32.mrf.mxu1  ;;  %v1172_v48 = vor.u32 1.1754944e-38, %v1171_v38  ;;  %vm1170_vm5 = vcmp.eq.f32.partialorder %v1169_v41, 8.507059e+37 }
 0x1ba   :  { %v1922_v25 = vpop.eup %1921  ;;  %v1127_v26 = vadd.f32 %v1113_v20, %v1002_v23 }
 0x1bb   :  { %v1154_v27 = vadd.f32 1.0, %v1922_v25 }
 0x1bc   :  { %v1780_v28 = vmul.f32 -1.442695, %v1127_v26 }
 0x1bd   :  { %v1924_v30 = vpop.eup %1923  ;;  %1925 = vrcp.f32 %v1154_v27  ;;  %v1027_v31 = vpop.f32.mrf.mxu2  ;;  %v1186_v55 = vand.u32 2147483648, %v1154_v27  ;;  %v1184_v59 = vand.u32 2147483647, %v1154_v27  ;;  %vm1180_vm7 = vweird.f32 %v1154_v27 }
 0x1be   :  { %v1161_v32 = vmul.f32 %v1924_v30, %v1153_v18  ;;  %1927 = vpow2.f32 %v1780_v28  ;;  %v1028_v33 = vadd.f32 %v1027_v31, %v1014_v3  ;;  %vm1166_vm2 = vweird.f32 %v1924_v30 }
 0x1bf   :  { %v990_v34 = vpop.f32.mrf.mxu3  ;;  %v1003_v35 = vpop.f32.mrf.mxu0  ;;  %vm1167_vm4 = vmor %vm1165_vm3, %vm1166_vm2  ;;  %v1187_v1 = vor.u32 1.1754944e-38, %v1186_v55  ;;  %vm1185_vm9 = vcmp.eq.f32.partialorder %v1184_v59, 8.507059e+37 }
 0x1c0   :  { %v1162_v36 = vsub.f32 1.0, %v1161_v32  ;;  %v1128_v37 = vadd.f32 %v1114_v29, %v1028_v33 }
 0x1c1   :  { %v1066_v39 = vpop.f32.mrf.mxu1 }
 0x1c2   :  { %v1163_v40 = vmul.f32 %v1924_v30, %v1162_v36  ;;  %v1781_v42 = vmul.f32 -1.442695, %v1128_v37 }
 0x1c3   :  { %v1926_v43 = vpop.eup %1925 }
 0x1c4   :  { %v1928_v44 = vpop.eup %1927  ;;  %v1164_v45 = vadd.f32 %v1924_v30, %v1163_v40  ;;  %v1176_v47 = vmul.f32 %v1926_v43, %v1154_v27  ;;  %1929 = vpow2.f32 %v1781_v42  ;;  %vm1181_vm6 = vweird.f32 %v1926_v43 }
 0x1c5   :  { %v1155_v49 = vadd.f32 1.0, %v1928_v44  ;;  %v1029_v50 = vpop.f32.mrf.mxu2  ;;  %vm1182_vm8 = vmor %vm1180_vm7, %vm1181_vm6  ;;  %v1117_v44 = vperm.slane %v2193_v2, 6 }
 0x1c6   :  { %v1168_v51 = vsel %vm1167_vm4, %v1924_v30, %v1164_v45  ;;  %v1177_v52 = vsub.f32 1.0, %v1176_v47 }
 0x1c7   :  { %v1173_v54 = vsel %vm1170_vm5, %v1172_v48, %v1168_v51  ;;  %1931 = vrcp.f32 %v1155_v49  ;;  %v1040_v56 = vpop.f32.mrf.mxu3  ;;  %v1053_v57 = vpop.f32.mrf.mxu0  ;;  %v1201_v15 = vand.u32 2147483648, %v1155_v49  ;;  %v1199_v17 = vand.u32 2147483647, %v1155_v49 }
 0x1c8   :  { %1265 = vst [vmem:[#allocation11] sm:$0xff] %v1173_v54  ;;  %v1178_v58 = vmul.f32 %v1926_v43, %v1177_v52  ;;  %v1054_v60 = vadd.f32 %v1053_v57, %v1040_v56  ;;  %vm1195_vm11 = vweird.f32 %v1155_v49 }
 0x1c9   :  { %v1068_v61 = vpop.f32.mrf.mxu1  ;;  %v1202_v23 = vor.u32 1.1754944e-38, %v1201_v15  ;;  %vm1200_vm13 = vcmp.eq.f32.partialorder %v1199_v17, 8.507059e+37 }
 0x1ca   :  { %v1930_v62 = vpop.eup %1929  ;;  %v1179_v63 = vadd.f32 %v1926_v43, %v1178_v58  ;;  %v1129_v0 = vadd.f32 %v1115_v53, %v1054_v60 }
 0x1cb   :  { %v1156_v4 = vadd.f32 1.0, %v1930_v62 }
 0x1cc   :  { %v1183_v5 = vsel %vm1182_vm8, %v1926_v43, %v1179_v63  ;;  %v1782_v6 = vmul.f32 -1.442695, %v1129_v0 }
 0x1cd   :  { %v1932_v7 = vpop.eup %1931  ;;  %v1188_v8 = vsel %vm1185_vm9, %v1187_v1, %v1183_v5  ;;  %1933 = vrcp.f32 %v1156_v4  ;;  %v1079_v11 = vpop.f32.mrf.mxu2  ;;  %v1216_v29 = vand.u32 2147483648, %v1156_v4  ;;  %v1214_v31 = vand.u32 2147483647, %v1156_v4 }
 0x1ce   :  { %1266 = vst [vmem:[#allocation11 + $0x8] sm:$0xff] %v1188_v8  ;;  %v1191_v10 = vmul.f32 %v1932_v7, %v1155_v49  ;;  %1935 = vpow2.f32 %v1782_v6  ;;  %v1080_v12 = vadd.f32 %v1079_v11, %v1066_v39  ;;  %vm1196_vm10 = vweird.f32 %v1932_v7 }
 0x1cf   :  { %v1042_v13 = vpop.f32.mrf.mxu3  ;;  %v1055_v46 = vpop.f32.mrf.mxu0  ;;  %vm1197_vm12 = vmor %vm1195_vm11, %vm1196_vm10  ;;  %vm1210_vm15 = vweird.f32 %v1156_v4  ;;  %v1217_v34 = vor.u32 1.1754944e-38, %v1216_v29  ;;  %vm1215_vm2 = vcmp.eq.f32.partialorder %v1214_v31, 8.507059e+37 }
 0x1d0   :  { %v1192_v14 = vsub.f32 1.0, %v1191_v10  ;;  %v1130_v3 = vadd.f32 %v1116_v9, %v1080_v12 }
 0x1d2   :  { %v1193_v16 = vmul.f32 %v1932_v7, %v1192_v14  ;;  %v1783_v19 = vmul.f32 -1.442695, %v1130_v3 }
 0x1d3   :  { %v1934_v18 = vpop.eup %1933 }
 0x1d4   :  { %v1936_v20 = vpop.eup %1935  ;;  %v1194_v21 = vadd.f32 %v1932_v7, %v1193_v16  ;;  %v1206_v22 = vmul.f32 %v1934_v18, %v1156_v4  ;;  %1937 = vpow2.f32 %v1783_v19  ;;  %vm1211_vm14 = vweird.f32 %v1934_v18 }
 0x1d5   :  { %v1157_v24 = vadd.f32 1.0, %v1936_v20  ;;  %v1081_v27 = vpop.f32.mrf.mxu2  ;;  %vm1212_vm1 = vmor %vm1210_vm15, %vm1211_vm14 }
 0x1d6   :  { %v1198_v25 = vsel %vm1197_vm12, %v1932_v7, %v1194_v21  ;;  %v1207_v26 = vsub.f32 1.0, %v1206_v22 }
 0x1d7   :  { %v1203_v28 = vsel %vm1200_vm13, %v1202_v23, %v1198_v25  ;;  %1939 = vrcp.f32 %v1157_v24  ;;  %v1231_v41 = vand.u32 2147483648, %v1157_v24  ;;  %v1229_v43 = vand.u32 2147483647, %v1157_v24 }
 0x1d8   :  { %1267 = vst [vmem:[#allocation11 + $0x10] sm:$0xff] %v1203_v28  ;;  %v1208_v30 = vmul.f32 %v1934_v18, %v1207_v26  ;;  %vm1225_vm4 = vweird.f32 %v1157_v24 }
 0x1d9   :  { %v1232_v50 = vor.u32 1.1754944e-38, %v1231_v41  ;;  %vm1230_vm6 = vcmp.eq.f32.partialorder %v1229_v43, 8.507059e+37 }
 0x1da   :  { %v1209_v32 = vadd.f32 %v1934_v18, %v1208_v30  ;;  %v1938_v33 = vpop.eup %1937 }
 0x1db   :  { %v1158_v36 = vadd.f32 1.0, %v1938_v33 }
 0x1dc   :  { %v1213_v35 = vsel %vm1212_vm1, %v1934_v18, %v1209_v32 }
 0x1dd   :  { %v1940_v37 = vpop.eup %1939  ;;  %v1218_v38 = vsel %vm1215_vm2, %v1217_v34, %v1213_v35  ;;  %1941 = vrcp.f32 %v1158_v36  ;;  %v1246_v57 = vand.u32 2147483648, %v1158_v36  ;;  %v1244_v59 = vand.u32 2147483647, %v1158_v36 }
 0x1de   :  { %1268 = vst [vmem:[#allocation11 + $0x18] sm:$0xff] %v1218_v38  ;;  %v1221_v39 = vmul.f32 %v1940_v37, %v1157_v24  ;;  %vm1226_vm3 = vweird.f32 %v1940_v37  ;;  %vm1240_vm8 = vweird.f32 %v1158_v36 }
 0x1df   :  { %vm1227_vm5 = vmor %vm1225_vm4, %vm1226_vm3  ;;  %v1247_v61 = vor.u32 1.1754944e-38, %v1246_v57  ;;  %vm1245_vm10 = vcmp.eq.f32.partialorder %v1244_v59, 8.507059e+37 }
 0x1e0   :  { %v1222_v40 = vsub.f32 1.0, %v1221_v39 }
 0x1e2   :  { %v1223_v42 = vmul.f32 %v1940_v37, %v1222_v40 }
 0x1e3   :  { %v1942_v45 = vpop.eup %1941 }
 0x1e4   :  { %v1224_v47 = vadd.f32 %v1940_v37, %v1223_v42  ;;  %v1236_v51 = vmul.f32 %v1942_v45, %v1158_v36  ;;  %vm1241_vm7 = vweird.f32 %v1942_v45 }
 0x1e5   :  { %vm1242_vm9 = vmor %vm1240_vm8, %vm1241_vm7 }
 0x1e6   :  { %v1228_v53 = vsel %vm1227_vm5, %v1940_v37, %v1224_v47  ;;  %v1237_v55 = vsub.f32 1.0, %v1236_v51 }
 0x1e7   :  { %v1092_v48 = vpop.f32.mrf.mxu3  ;;  %v1105_v49 = vpop.f32.mrf.mxu0  ;;  %v1233_v54 = vsel %vm1230_vm6, %v1232_v50, %v1228_v53 }
 0x1e8   :  { %v1106_v52 = vadd.f32 %v1105_v49, %v1092_v48  ;;  %1269 = vst [vmem:[#allocation11 + $0x20] sm:$0xff] %v1233_v54  ;;  %v1238_v58 = vmul.f32 %v1942_v45, %v1237_v55 }
 0x1ea   :  { %v1131_v56 = vadd.f32 %v1117_v44, %v1106_v52  ;;  %v1239_v60 = vadd.f32 %v1942_v45, %v1238_v58 }
 0x1ec   :  { %v1784_v2 = vmul.f32 -1.442695, %v1131_v56  ;;  %v1243_v0 = vsel %vm1242_vm9, %v1942_v45, %v1239_v60 }
 0x1ed   :  { %v1248_v1 = vsel %vm1245_vm10, %v1247_v61, %v1243_v0 }
 0x1ee   :  { %1943 = vpow2.f32 %v1784_v2  ;;  %1270 = vst [vmem:[#allocation11 + $0x28] sm:$0xff] %v1248_v1 }
 0x1ef   :  { %v1094_v62 = vpop.f32.mrf.mxu3  ;;  %v1107_v63 = vpop.f32.mrf.mxu0 }
 0x1f4   :  { %v1944_v4 = vpop.eup %1943 }
 0x1f5   :  { %v1159_v5 = vadd.f32 1.0, %v1944_v4 }
 0x1f7   :  { %1945 = vrcp.f32 %v1159_v5  ;;  %v1261_v9 = vand.u32 2147483648, %v1159_v5  ;;  %v1259_v11 = vand.u32 2147483647, %v1159_v5  ;;  %vm1255_vm12 = vweird.f32 %v1159_v5 }
 0x1f9   :  { %v1262_v13 = vor.u32 1.1754944e-38, %v1261_v9  ;;  %vm1260_vm14 = vcmp.eq.f32.partialorder %v1259_v11, 8.507059e+37 }
 0x1fd   :  { %v1946_v6 = vpop.eup %1945 }
 0x1fe   :  { %v1251_v7 = vmul.f32 %v1946_v6, %v1159_v5  ;;  %vm1256_vm11 = vweird.f32 %v1946_v6 }
 0x1ff   :  { %vm1257_vm13 = vmor %vm1255_vm12, %vm1256_vm11 }
 0x200   :  { %v1252_v8 = vsub.f32 1.0, %v1251_v7 }
 0x202   :  { %v1253_v10 = vmul.f32 %v1946_v6, %v1252_v8 }
 0x204   :  { %v1254_v12 = vadd.f32 %v1946_v6, %v1253_v10 }
 0x206   :  { %v1258_v46 = vsel %vm1257_vm13, %v1946_v6, %v1254_v12 }
 0x207   :  { %v1263_v14 = vsel %vm1260_vm14, %v1262_v13, %v1258_v46 }
 0x208   :  { %1271 = vst.msk [vmem:[#allocation11 + $0x30] sm:$0xff] %vm116_vm0, %v1263_v14 }
 0x209   :  { %1282 = dma.vmem_to_hbm [thread:$0]  %s1278_s30, 896, %s1280_s10, [#allocation4]  }
 0x20a   :  { %2097 = dma.done.wait [#allocation4], 896  }
 0x20b   :  { %2098 = vsyncadd [#allocation4], 4294966400 }
 0x20c   :  { %1287 = vsyncpa [#allocation3], 1 }
 0x20d   :  { %1288 = vsyncpa [#allocation6], 1 }
 0x20e   :  { %1289 = vsyncpa [#allocation9], 1 }
 0x20f   :  { %1290 = vsyncpa [#allocation4], 1 }

</bundles_post_ra>
